<compile_context>
chip_gen: v6e
topology: v6e:2x2x1
jax: 0.10.0
libtpu: 0.0.40
codegen_flags: <defaults>
</compile_context>

<pallas_src>
import functools

import numpy as np
import jax
import jax.numpy as jnp
from jax import lax
from jax.experimental import pallas as pl
from jax.experimental.pallas import tpu as pltpu


def _qkv_kernel(x_ref, w_ref, b_ref, o_ref, acc_ref):
    """One (tm, tn) tile of  out = x @ W_fused.T + b_fused.

    Grid = (N_tiles, M_tiles, K_tiles); the contraction axis K is innermost and
    marked "arbitrary"; partial products accumulate in an f32 VMEM scratch.
    """
    k = pl.program_id(2)

    @pl.when(k == 0)
    def _init():
        acc_ref[...] = jnp.zeros_like(acc_ref)

    # Contract the shared last (n_hid) axis of x (tm, tk) and W (tn, tk):
    # exactly x @ W.T without materializing a transpose.
    acc_ref[...] += lax.dot_general(
        x_ref[...], w_ref[...],
        dimension_numbers=(((1,), (1,)), ((), ())),
        preferred_element_type=jnp.float32)

    @pl.when(k == pl.num_programs(2) - 1)
    def _finalize():
        o_ref[...] = (acc_ref[...] + b_ref[...]).astype(o_ref.dtype)


def _round_up(x, m):
    return (x + m - 1) // m * m


def _vmem_budget_bytes():
    """Generation-aware scoped-VMEM limit (smaller headroom on v7x)."""
    cap = 128 * 1024 * 1024
    try:
        cap = int(getattr(pltpu.get_tpu_info(), "vmem_capacity_bytes", cap))
    except Exception:
        pass
    if cap <= 64 * 1024 * 1024:            # v7x-class core (64 MiB physical)
        return min(40 * 1024 * 1024, (cap * 5) // 8)
    return 64 * 1024 * 1024                # v5e / v6e (128 MiB physical)


def _vmem_estimate_bytes(tm, tn, tk, in_bytes, out_bytes):
    return (2 * tm * tk * in_bytes         # x blocks (double-buffered)
            + 2 * tn * tk * in_bytes       # fused-weight blocks
            + 2 * tn * 4                   # bias blocks (f32)
            + 2 * tm * tn * out_bytes      # output blocks
            + tm * tn * 4)                 # f32 accumulator scratch


def _choose_tiles(M, N, K, in_bytes, out_bytes, budget, sub):
    """Pick (tm, Mp, tn, Np, tk, Kp) under the VMEM budget.

    Preference: largest output tile area, least padding work, whole-K blocks
    (so weights stay loop-invariant across the M sweep), largest tk.
    """
    # Row (sublane) tiles: multiples of the dtype packing.
    tm_whole = _round_up(M, sub)
    tm_cands = []
    if tm_whole <= 512:
        tm_cands.append((tm_whole, tm_whole))
    tm_cands += [(t, _round_up(M, t))
                 for t in (512, 256, 128, 64, 32, 16, 8)
                 if t % sub == 0 and t < tm_whole]
    if not tm_cands:
        tm_cands = [(sub, _round_up(M, sub))]

    def lane_cands(dim, whole_limit, tiles):
        cands = []
        if dim <= whole_limit:
            cands.append((dim, dim))              # full dim (no 128 constraint)
        divs = [t for t in tiles if t < dim and dim % t == 0]
        cands += [(t, dim) for t in divs]
        if not divs:
            cands += [(t, _round_up(dim, t)) for t in tiles if t < dim]
        if not cands:
            cands = [(dim, dim)]
        return cands

    tn_cands = lane_cands(N, 512, (512, 384, 256, 128))
    tk_cands = lane_cands(K, K, (2048, 1024, 512, 256))   # whole-K always listed

    best, best_score = None, None
    for tk, Kp in tk_cands:
        for tn, Np in tn_cands:
            for tm, Mp in tm_cands:
                if _vmem_estimate_bytes(tm, tn, tk, in_bytes, out_bytes) > budget:
                    continue
                work = Mp * Np * Kp                       # padded FLOP/traffic proxy
                score = (min(tm, 512) * min(tn, 512), -work, tk, tm)
                if best_score is None or score > best_score:
                    best_score, best = score, (tm, Mp, tn, Np, tk, Kp)
    if best is None:
        # Nothing fits the soft budget: fall back to the smallest tiles and let
        # the compiler's scoped-VMEM limit arbitrate.
        tm, Mp = tm_cands[-1]
        tn, Np = tn_cands[-1]
        tk, Kp = tk_cands[-1]
        best = (tm, Mp, tn, Np, tk, Kp)
    return best


@functools.partial(jax.jit, static_argnames=("mxu_dtype",))
def embedding_qkv(x, wq, bq, wk, bk, wv, bv, *, mxu_dtype=None):
    """Fused Q/K/V projections. Returns (Q, K, V), each with x's shape/dtype.

    mxu_dtype: optionally cast x / weights (e.g. jnp.bfloat16) before the MXU
    for a higher matmul rate; accumulation and the bias add stay f32.
    """
    orig_shape = x.shape
    n_hid = orig_shape[-1]
    assert wq.shape == (n_hid, n_hid) and wk.shape == (n_hid, n_hid)
    assert wv.shape == (n_hid, n_hid)
    assert bq.shape == (n_hid,) and bk.shape == (n_hid,) and bv.shape == (n_hid,)

    out_dtype = x.dtype
    compute_dtype = np.dtype(mxu_dtype) if mxu_dtype is not None else np.dtype(x.dtype)

    x2 = x.reshape(-1, n_hid).astype(compute_dtype)
    wf = jnp.concatenate([wq, wk, wv], axis=0).astype(compute_dtype)  # (3*n_hid, n_hid)
    bf = jnp.concatenate([bq, bk, bv]).astype(jnp.float32)[None, :]   # (1, 3*n_hid)

    M, K = x2.shape
    N = 3 * n_hid

    in_bytes = compute_dtype.itemsize
    out_bytes = np.dtype(out_dtype).itemsize
    sub = max(8, 32 // min(in_bytes, out_bytes))      # sublane packing multiple

    budget = _vmem_budget_bytes()
    tm, Mp, tn, Np, tk, Kp = _choose_tiles(
        M, N, K, in_bytes, out_bytes, int(budget * 0.85), sub)

    if (Mp, Kp) != x2.shape:
        x2 = jnp.pad(x2, ((0, Mp - M), (0, Kp - K)))
    if (Np, Kp) != wf.shape:
        wf = jnp.pad(wf, ((0, Np - N), (0, Kp - K)))
    if Np != N:
        bf = jnp.pad(bf, ((0, 0), (0, Np - N)))

    grid = (Np // tn, Mp // tm, Kp // tk)   # weights loop-invariant over the M sweep

    cost = pl.CostEstimate(
        flops=2 * M * N * K,
        bytes_accessed=(Mp * Kp * in_bytes + Np * Kp * in_bytes
                        + Np * 4 + Mp * Np * out_bytes),
        transcendentals=0)

    out = pl.pallas_call(
        _qkv_kernel,
        out_shape=jax.ShapeDtypeStruct((Mp, Np), out_dtype),
        grid_spec=pltpu.PrefetchScalarGridSpec(
            num_scalar_prefetch=0,
            grid=grid,
            in_specs=[
                pl.BlockSpec((tm, tk), lambda n, m, k: (m, k)),   # x tile
                pl.BlockSpec((tn, tk), lambda n, m, k: (n, k)),   # fused W tile
                pl.BlockSpec((1, tn), lambda n, m, k: (0, n)),    # fused bias
            ],
            out_specs=pl.BlockSpec((tm, tn), lambda n, m, k: (m, n)),
            scratch_shapes=[pltpu.VMEM((tm, tn), jnp.float32)],
        ),
        compiler_params=pltpu.CompilerParams(
            dimension_semantics=("parallel", "parallel", "arbitrary"),
            vmem_limit_bytes=budget),
        cost_estimate=cost,
    )(x2, wf, bf)

    out = out[:M]
    q = out[:, 0 * n_hid:1 * n_hid].reshape(orig_shape)
    k = out[:, 1 * n_hid:2 * n_hid].reshape(orig_shape)
    v = out[:, 2 * n_hid:3 * n_hid].reshape(orig_shape)
    return q, k, v


def _reference(x, wq, bq, wk, bk, wv, bv):
    f = lambda w, b: jnp.einsum("...k,nk->...n", x, w) + b
    return f(wq, bq), f(wk, bk), f(wv, bv)


if __name__ == "__main__":
    key = jax.random.PRNGKey(0)
    kx, k1, k2, k3, k4, k5, k6 = jax.random.split(key, 7)

    B, L, n_hid = 2, 8, 32          # small test shapes
    x = jax.random.normal(kx, (B, L, n_hid), dtype=jnp.float32)
    # nn.Linear stores weights as (out_features, in_features).
    wq = jax.random.normal(k1, (n_hid, n_hid), dtype=jnp.float32) * 0.1
    wk = jax.random.normal(k2, (n_hid, n_hid), dtype=jnp.float32) * 0.1
    wv = jax.random.normal(k3, (n_hid, n_hid), dtype=jnp.float32) * 0.1
    bq = jax.random.normal(k4, (n_hid,), dtype=jnp.float32) * 0.1
    bk = jax.random.normal(k5, (n_hid,), dtype=jnp.float32) * 0.1
    bv = jax.random.normal(k6, (n_hid,), dtype=jnp.float32) * 0.1

    Q, K, V = embedding_qkv(x, wq, bq, wk, bk, wv, bv)
    jax.block_until_ready((Q, K, V))

    Qr, Kr, Vr = _reference(x, wq, bq, wk, bk, wv, bv)
    assert Q.shape == x.shape and K.shape == x.shape and V.shape == x.shape
    assert jnp.allclose(Q, Qr, atol=1e-5, rtol=1e-5)
    assert jnp.allclose(K, Kr, atol=1e-5, rtol=1e-5)
    assert jnp.allclose(V, Vr, atol=1e-5, rtol=1e-5)

    # Perf mode: feed the MXU bf16 with f32 accumulation (looser tolerance per
    # the usual bf16-input rounding).
    Qb, Kb, Vb = embedding_qkv(x, wq, bq, wk, bk, wv, bv, mxu_dtype=jnp.bfloat16)
    jax.block_until_ready((Qb, Kb, Vb))
    assert jnp.allclose(Qb, Qr, atol=5e-2, rtol=5e-2)
    assert jnp.allclose(Kb, Kr, atol=5e-2, rtol=5e-2)
    assert jnp.allclose(Vb, Vr, atol=5e-2, rtol=5e-2)

    print("KERNEL_OK")
</pallas_src>

<mosaic_0001>
module attributes {stable_mosaic.version = 11 : i64} {
  func.func @_qkv_kernel(%arg0: i32, %arg1: i32, %arg2: i32, %arg3: memref<16x32xf32, #tpu.memory_space<vmem>>, %arg4: memref<96x32xf32, #tpu.memory_space<vmem>>, %arg5: memref<1x96xf32, #tpu.memory_space<vmem>>, %arg6: memref<16x96xf32, #tpu.memory_space<vmem>>, %arg7: memref<16x96xf32, #tpu.memory_space<vmem>>) attributes {dimension_semantics = [#tpu.dimension_semantics<parallel>, #tpu.dimension_semantics<parallel>, #tpu.dimension_semantics<arbitrary>], iteration_bounds = array<i64: 1, 1, 1>, scalar_prefetch = 0 : i64, scratch_operands = 1 : i64, tpu.core_type = #tpu.core_type<tc>, window_params = [{transform_indices = @transform_0, window_bounds = array<i64: 16, 32>}, {transform_indices = @transform_1, window_bounds = array<i64: 96, 32>}, {transform_indices = @transform_2, window_bounds = array<i64: 1, 96>}, {transform_indices = @transform_3, window_bounds = array<i64: 16, 96>}]} {
    %c0_i32 = arith.constant 0 : i32
    %0 = arith.cmpi eq, %arg2, %c0_i32 : i32
    %1 = arith.extui %0 : i1 to i32
    %c0_i32_0 = arith.constant 0 : i32
    %2 = arith.cmpi ne, %1, %c0_i32_0 : i32
    scf.if %2 {
      %cst_10 = arith.constant 0.000000e+00 : f32
      %12 = vector.broadcast %cst_10 : f32 to vector<16x96xf32>
      %c0_11 = arith.constant 0 : index
      %c0_12 = arith.constant 0 : index
      %13 = vector.load %arg7[%c0_11, %c0_12] : memref<16x96xf32, #tpu.memory_space<vmem>>, vector<16x96xf32>
      tpu.vector_store %arg7[%c0_11, %c0_12], %12 {strides = array<i32>} : memref<16x96xf32, #tpu.memory_space<vmem>>, vector<16x96xf32>,
    } else {
    }
    %c0 = arith.constant 0 : index
    %c0_1 = arith.constant 0 : index
    %3 = vector.load %arg7[%c0, %c0_1] : memref<16x96xf32, #tpu.memory_space<vmem>>, vector<16x96xf32>
    %c0_2 = arith.constant 0 : index
    %c0_3 = arith.constant 0 : index
    %4 = vector.load %arg3[%c0_2, %c0_3] : memref<16x32xf32, #tpu.memory_space<vmem>>, vector<16x32xf32>
    %c0_4 = arith.constant 0 : index
    %c0_5 = arith.constant 0 : index
    %5 = vector.load %arg4[%c0_4, %c0_5] : memref<96x32xf32, #tpu.memory_space<vmem>>, vector<96x32xf32>
    %cst = arith.constant dense<0.000000e+00> : vector<16x96xf32>
    %6 = tpu.matmul %4, %5, %cst {dimension_numbers = #tpu.dot_dimension_numbers<[1], [1], [0], [0], [0, 0, 1, 0], [], []>} : vector<16x32xf32>, vector<96x32xf32>, vector<16x96xf32> -> vector<16x96xf32>
    %7 = arith.addf %3, %6 : vector<16x96xf32>
    %c0_6 = arith.constant 0 : index
    %c0_7 = arith.constant 0 : index
    %8 = vector.load %arg7[%c0_6, %c0_7] : memref<16x96xf32, #tpu.memory_space<vmem>>, vector<16x96xf32>
    tpu.vector_store %arg7[%c0_6, %c0_7], %7 {strides = array<i32>} : memref<16x96xf32, #tpu.memory_space<vmem>>, vector<16x96xf32>,
    %c0_i32_8 = arith.constant 0 : i32
    %9 = arith.cmpi eq, %arg2, %c0_i32_8 : i32
    %10 = arith.extui %9 : i1 to i32
    %c0_i32_9 = arith.constant 0 : i32
    %11 = arith.cmpi ne, %10, %c0_i32_9 : i32
    scf.if %11 {
      %c0_10 = arith.constant 0 : index
      %c0_11 = arith.constant 0 : index
      %12 = vector.load %arg7[%c0_10, %c0_11] : memref<16x96xf32, #tpu.memory_space<vmem>>, vector<16x96xf32>
      %c0_12 = arith.constant 0 : index
      %c0_13 = arith.constant 0 : index
      %13 = vector.load %arg5[%c0_12, %c0_13] : memref<1x96xf32, #tpu.memory_space<vmem>>, vector<1x96xf32>
      %14 = vector.broadcast %13 : vector<1x96xf32> to vector<16x96xf32>
      %15 = arith.addf %12, %14 : vector<16x96xf32>
      %c0_14 = arith.constant 0 : index
      %c0_15 = arith.constant 0 : index
      %16 = vector.load %arg6[%c0_14, %c0_15] : memref<16x96xf32, #tpu.memory_space<vmem>>, vector<16x96xf32>
      tpu.vector_store %arg6[%c0_14, %c0_15], %15 {strides = array<i32>} : memref<16x96xf32, #tpu.memory_space<vmem>>, vector<16x96xf32>,
    } else {
    }
    return
  }
  func.func @transform_0(%arg0: i32, %arg1: i32, %arg2: i32) -> (i32, i32) {
    %c0_i32 = arith.constant 0 : i32
    return %arg1, %arg2 : i32, i32
  }
  func.func @transform_1(%arg0: i32, %arg1: i32, %arg2: i32) -> (i32, i32) {
    %c0_i32 = arith.constant 0 : i32
    return %arg0, %arg2 : i32, i32
  }
  func.func @transform_2(%arg0: i32, %arg1: i32, %arg2: i32) -> (i32, i32) {
    %c0_i32 = arith.constant 0 : i32
    %c0_i32_0 = arith.constant 0 : i32
    return %c0_i32, %arg0 : i32, i32
  }
  func.func @transform_3(%arg0: i32, %arg1: i32, %arg2: i32) -> (i32, i32) {
    %c0_i32 = arith.constant 0 : i32
    return %arg1, %arg0 : i32, i32
  }
}

</mosaic_0001>

<bundles_post_ra>
// kernel: embedding_qkv.1
= control target key start
LH: loop header
LB: loop body
LE: loop exit
PB: predicated region body
PF: predicated region fallthrough
CT: control target
= control target key end

     0   :  { %vm37_vm0 = vcmask 261120   ;;  %vm18_vm1 = vcmask 785408   ;;  %v237_v2 = vmov 0.0   ;;  %s341_s1 = inlined_call_operand.vmem [shape: f32[96,32], index: 1, kind: input, shape index: {}]   ;;  %s342_s0 = inlined_call_operand.vmem [shape: f32[16,32], index: 0, kind: input, shape index: {}]   ;;  %s343_s2 = inlined_call_operand.vmem [shape: f32[1,96], index: 2, kind: input, shape index: {}]   ;;  %s344_s3 = inlined_call_operand.vmem [shape: f32[16,96], index: 3, kind: output, shape index: {}]  }
   0x1   :  { %v36_v0 = vld [vmem:[%s341_s1 + $0x58] sm:$0xff]  ;;  %v35_v1 = vld [vmem:[%s341_s1 + $0x50] sm:$0xff]  ;;  %20 = vst.msk [vmem:[#allocation2 + $0x8] sm:$0xff] %vm18_vm1, %v237_v2  ;;  %19 = vst.msk [vmem:[#allocation2] sm:$0xff] %vm18_vm1, %v237_v2 }
   0x2   :  { %209 = vmatprep.subr.msk.mxu0 %vm37_vm0, %v36_v0  ;;  %v34_v3 = vld [vmem:[%s341_s1 + $0x48] sm:$0xff]  ;;  %v23_v4 = vld [vmem:[%s342_s0] sm:$0xff]  ;;  %v32_v6 = vld [vmem:[%s341_s1 + $0x38] sm:$0xff] }
   0x3   :  { %210 = vmatpush3.xpose.msk.msra.mxu0 %vm37_vm0, %v36_v0  ;;  %233 = vmatprep.mubr.msk.f32.mxu0 %vm37_vm0, %v23_v4  ;;  %v33_v5 = vld [vmem:[%s341_s1 + $0x40] sm:$0xff]  ;;  %v31_v7 = vld [vmem:[%s341_s1 + $0x30] sm:$0xff]  ;;  %v30_v8 = vld [vmem:[%s341_s1 + $0x28] sm:$0xff] }
   0x4   :  { %211 = vmatprep.subr.msk.mxu0 %vm37_vm0, %v35_v1  ;;  %v29_v9 = vld [vmem:[%s341_s1 + $0x20] sm:$0xff]  ;;  %v28_v10 = vld [vmem:[%s341_s1 + $0x18] sm:$0xff]  ;;  %v27_v11 = vld [vmem:[%s341_s1 + $0x10] sm:$0xff] }
   0x5   :  { %v26_v12 = vld [vmem:[%s341_s1 + $0x8] sm:$0xff]  ;;  %v25_v13 = vld [vmem:[%s341_s1] sm:$0xff] }
   0x6   :  { %v24_v14 = vld [vmem:[%s342_s0 + $0x8] sm:$0xff]  ;;  %v194_v21 = vld [vmem:[%s343_s2] ss:$0 sm:$0xff] }
   0x7   :  { %212 = vmatpush3.xpose.msk.msra.mxu0 %vm37_vm0, %v35_v1 }
   0x8   :  { %213 = vmatprep.subr.msk.mxu0 %vm37_vm0, %v34_v3  ;;  %v22_v15 = vld [vmem:[#allocation2 + $0x8] sm:$0xff]  ;;  %v21_v17 = vld [vmem:[#allocation2] sm:$0xff] }
   0xb   :  { %214 = vmatpush3.xpose.msk.msra.mxu0 %vm37_vm0, %v34_v3 }
   0xc   :  { %215 = vmatprep.subr.msk.mxu0 %vm37_vm0, %v33_v5 }
   0xf   :  { %216 = vmatpush3.xpose.msk.msra.mxu0 %vm37_vm0, %v33_v5 }
  0x10   :  { %217 = vmatprep.subr.msk.mxu0 %vm37_vm0, %v32_v6 }
  0x13   :  { %218 = vmatpush3.xpose.msk.msra.mxu0 %vm37_vm0, %v32_v6 }
  0x14   :  { %219 = vmatprep.subr.msk.mxu0 %vm37_vm0, %v31_v7 }
  0x17   :  { %220 = vmatpush3.xpose.msk.msra.mxu0 %vm37_vm0, %v31_v7 }
  0x18   :  { %221 = vmatprep.subr.msk.mxu0 %vm37_vm0, %v30_v8 }
  0x1b   :  { %222 = vmatpush3.xpose.msk.msra.mxu0 %vm37_vm0, %v30_v8 }
  0x1c   :  { %223 = vmatprep.subr.msk.mxu0 %vm37_vm0, %v29_v9 }
  0x1f   :  { %224 = vmatpush3.xpose.msk.msra.mxu0 %vm37_vm0, %v29_v9 }
  0x20   :  { %225 = vmatprep.subr.msk.mxu0 %vm37_vm0, %v28_v10 }
  0x23   :  { %226 = vmatpush3.xpose.msk.msra.mxu0 %vm37_vm0, %v28_v10 }
  0x24   :  { %227 = vmatprep.subr.msk.mxu0 %vm37_vm0, %v27_v11 }
  0x27   :  { %228 = vmatpush3.xpose.msk.msra.mxu0 %vm37_vm0, %v27_v11 }
  0x28   :  { %229 = vmatprep.subr.msk.mxu0 %vm37_vm0, %v26_v12 }
  0x2b   :  { %230 = vmatpush3.xpose.msk.msra.mxu0 %vm37_vm0, %v26_v12 }
  0x2c   :  { %231 = vmatprep.subr.msk.mxu0 %vm37_vm0, %v25_v13 }
  0x2f   :  { %232 = vmatpush3.xpose.msk.msra.mxu0 %vm37_vm0, %v25_v13 }
  0x32   :  { %234 = vmatmul.mubr.msk.f32.vlgmr.msra.gmra.mxu0 %vm37_vm0, %v24_v14 }
  0xf2   :  { %v235_v16 = vpop.f32.mrf.mxu0 }
  0xf3   :  { %v156_v18 = vadd.f32 %v235_v16, %v22_v15 }
  0xf4   :  { %v146_v19 = vpop.f32.mrf.mxu0 }
  0xf5   :  { %159 = vst.msk [vmem:[#allocation2 + $0x8] sm:$0xff] %vm18_vm1, %v156_v18  ;;  %v155_v20 = vadd.f32 %v146_v19, %v21_v17 }
  0xf7   :  { %158 = vst.msk [vmem:[#allocation2] sm:$0xff] %vm18_vm1, %v155_v20 }
  0xfc   :  { %v164_v22 = vld [vmem:[#allocation2 + $0x8] sm:$0xff] }
  0xfd   :  { %v173_v23 = vadd.f32 %v194_v21, %v164_v22 }
  0xfe   :  { %v163_v24 = vld [vmem:[#allocation2] sm:$0xff] }
  0xff   :  { %175 = vst.msk [vmem:[%s344_s3 + $0x8] sm:$0xff] %vm18_vm1, %v173_v23  ;;  %v172_v25 = vadd.f32 %v194_v21, %v163_v24 }
 0x101   :  { %174 = vst.msk [vmem:[%s344_s3] sm:$0xff] %vm18_vm1, %v172_v25 }

</bundles_post_ra>
